<compile_context>
chip_gen: v7x
topology: tpu7x:2x2x1
jax: 0.10.0
libtpu: 0.0.40
codegen_flags: <defaults>
</compile_context>

<pallas_src>
import math
import functools

import jax
import jax.numpy as jnp
from jax import lax
from jax.experimental import pallas as pl
from jax.experimental.pallas import tpu as pltpu


def _round_up(n: int, m: int) -> int:
    return (n + m - 1) // m * m


def _vmem_capacity_bytes() -> int:
    """Best-effort per-core VMEM capacity query (falls back to the smallest, v7x)."""
    try:
        cap = getattr(pltpu.get_tpu_info(), "vmem_capacity_bytes", None)
        if cap:
            return int(cap)
    except Exception:
        pass
    return 64 << 20


def _num_tensorcores() -> int:
    """Best-effort TensorCore count (for megacore row-tile splitting); defaults to 1."""
    try:
        info = pltpu.get_tpu_info()
        for name in ("num_cores", "core_count", "tensorcore_count", "num_tensorcores"):
            v = getattr(info, name, None)
            if isinstance(v, int) and v > 0:
                return v
    except Exception:
        pass
    try:
        v = getattr(jax.devices()[0], "num_cores", None)
        if isinstance(v, int) and v > 0:
            return v
    except Exception:
        pass
    return 1


def _gelu_exact(h):
    # Exact GELU (matches torch.nn.GELU() default, approximate='none').
    # erf runs on the EUP slot and overlaps the MXU matmuls.
    return 0.5 * h * (1.0 + lax.erf(h * (1.0 / math.sqrt(2.0))))


# ---------------------------------------------------------------------------
# Kernels
# ---------------------------------------------------------------------------

def _ffn_kernel_fast(x_ref, w1_ref, b1_ref, w2_ref, b2_ref, o_ref):
    # Whole padded hidden dimension resident in VMEM: single-shot, no reduction axis.
    h = jnp.dot(x_ref[...], w1_ref[...], preferred_element_type=jnp.float32)
    h = _gelu_exact(h + b1_ref[...].astype(jnp.float32))
    # TODO(synk): dropout omitted (p=0.0 / eval mode -> identity)
    out = jnp.dot(h.astype(w2_ref.dtype), w2_ref[...],
                  preferred_element_type=jnp.float32)
    o_ref[...] = (out + b2_ref[...].astype(jnp.float32)).astype(o_ref.dtype)


def _ffn_kernel_red(x_ref, w1_ref, b1_ref, w2_ref, b2_ref, o_ref, acc_ref):
    # x_ref:  (tm, dim_p)    w1_ref: (dim_p, th)   b1_ref: (1, th)
    # w2_ref: (th, dim_p)    b2_ref: (1, dim_p)
    # o_ref:  (tm, dim_p)    acc_ref: (tm, dim_p) f32 scratch
    k = pl.program_id(1)

    @pl.when(k == 0)
    def _():
        # Fold b2 into the accumulator init -> finalize is a pure cast.
        acc_ref[...] = jnp.broadcast_to(b2_ref[...].astype(jnp.float32), acc_ref.shape)

    h = jnp.dot(x_ref[...], w1_ref[...], preferred_element_type=jnp.float32)
    h = _gelu_exact(h + b1_ref[...].astype(jnp.float32))
    # TODO(synk): dropout omitted (p=0.0 / eval mode -> identity)
    acc_ref[...] += jnp.dot(h.astype(w2_ref.dtype), w2_ref[...],
                            preferred_element_type=jnp.float32)

    @pl.when(k == pl.num_programs(1) - 1)
    def _():
        o_ref[...] = acc_ref[...].astype(o_ref.dtype)


# ---------------------------------------------------------------------------
# Host-side helpers
# ---------------------------------------------------------------------------

def prepare_ffn_params(w1, b1, w2, b2, compute_dtype=None):
    """Pad (and optionally cast) the FFN weights to lane-dense 128 multiples ONCE,
    outside the hot path. Padded columns/rows are zero so they contribute exactly 0."""
    dim, hidden = w1.shape
    dim_p = _round_up(dim, 128)
    hidden_p = _round_up(hidden, 128)
    wdt = compute_dtype if compute_dtype is not None else w1.dtype
    w1_p = jnp.pad(w1, ((0, dim_p - dim), (0, hidden_p - hidden))).astype(wdt)
    w2_p = jnp.pad(w2, ((0, hidden_p - hidden), (0, dim_p - dim))).astype(wdt)
    b1_p = jnp.pad(b1.reshape(-1), (0, hidden_p - hidden)).reshape(1, hidden_p)
    b2_p = jnp.pad(b2.reshape(-1), (0, dim_p - dim)).reshape(1, dim_p)
    return w1_p, b1_p, w2_p, b2_p


def _vmem_tile_bytes(tm, th, dim_p, w_itemsize, x_itemsize, o_itemsize, with_acc):
    b = 2 * tm * dim_p * x_itemsize        # x tile, double-buffered
    b += 2 * tm * dim_p * o_itemsize       # out tile, double-buffered
    b += 2 * dim_p * th * w_itemsize       # W1 hidden chunk, double-buffered
    b += 2 * th * dim_p * w_itemsize       # W2 hidden chunk, double-buffered
    b += 2 * (th + dim_p) * w_itemsize     # biases
    b += 2 * tm * th * 4                   # f32 hidden activations + GELU temporaries
    if with_acc:
        b += tm * dim_p * 4                # f32 accumulator scratch
    return b


@functools.partial(jax.jit, static_argnames=("compute_dtype",))
def feed_forward(x, w1, b1, w2, b2, *, compute_dtype=None):
    """x: (batch, seq, dim). Weights either raw ((dim,hidden),(hidden,),(hidden,dim),(dim,))
    or pre-padded via prepare_ffn_params (recommended). Returns (batch, seq, dim)."""
    batch, seq, dim = x.shape
    M = batch * seq
    out_dtype = x.dtype

    # Accept raw or pre-padded weights; pad here only if needed (perf: pre-pad outside).
    if b1.ndim != 2 or (w1.shape[0] % 128) or (w1.shape[1] % 128):
        w1, b1, w2, b2 = prepare_ffn_params(w1, b1, w2, b2, compute_dtype)
    elif compute_dtype is not None and w1.dtype != compute_dtype:
        w1 = w1.astype(compute_dtype)
        w2 = w2.astype(compute_dtype)
    dim_p, hidden_p = w1.shape

    if compute_dtype is not None and x.dtype != compute_dtype:
        x = x.astype(compute_dtype)

    w_is = jnp.dtype(w1.dtype).itemsize
    x_is = jnp.dtype(x.dtype).itemsize
    o_is = jnp.dtype(out_dtype).itemsize

    # Generation-aware VMEM budget (~96 MiB on 128-MiB parts, ~48 MiB on 64-MiB parts).
    cap = _vmem_capacity_bytes()
    vmem_limit = int(min(int(0.75 * cap), cap - (12 << 20)))
    budget = vmem_limit - (8 << 20)  # headroom for Mosaic internal scratch / temporaries

    def fits(tm, th, with_acc):
        return _vmem_tile_bytes(tm, th, dim_p, w_is, x_is, o_is, with_acc) <= budget

    # Row tile: as large as VMEM allows (weight-bandwidth bound), sublane-aligned.
    sub = max(8, 32 // x_is)  # f32: 8, bf16: 16, int8/fp8: 32
    tm = min(1024, _round_up(M, sub))
    while tm > sub and not fits(tm, 128, True):
        tm = max(sub, _round_up(tm // 2, sub))

    # Megacore: keep at least one row tile per TensorCore (v7x) when possible.
    cores = _num_tensorcores()
    while cores > 1 and tm > sub and (M + tm - 1) // tm < cores:
        tm = max(sub, _round_up(tm // 2, sub))

    M_p = _round_up(M, tm)
    grid0 = M_p // tm

    # Fast path: whole padded hidden resident -> drop the reduction axis entirely.
    fast = fits(tm, hidden_p, False)
    if fast:
        th = hidden_p
    else:
        th_cap = 512 if cap <= (64 << 20) else 1024
        th = 128
        for d in range(hidden_p // 128, 0, -1):
            c = d * 128
            if c <= th_cap and hidden_p % c == 0 and fits(tm, c, True):
                th = c
                break

    # Pad activations (rows to tm multiple, features to lane-dense dim_p).
    x2d = x.reshape(M, dim)
    if M_p != M or dim_p != dim:
        x2d = jnp.pad(x2d, ((0, M_p - M), (0, dim_p - dim)))

    # Honest cost estimate: weights are streamed once per row tile in the reduction
    # path (constant index map -> streamed once in the fast path).
    weight_elems = 2 * dim_p * hidden_p + hidden_p + dim_p
    weight_passes = 1 if fast else grid0
    cost = pl.CostEstimate(
        flops=int(4 * M_p * dim_p * hidden_p),
        transcendentals=int(M_p * hidden_p),
        bytes_accessed=int(x_is * M_p * dim_p + o_is * M_p * dim_p
                           + w_is * weight_passes * weight_elems),
    )

    if fast:
        grid = (grid0,)
        in_specs = [
            pl.BlockSpec((tm, dim_p), lambda i: (i, 0)),         # x rows tile
            pl.BlockSpec((dim_p, hidden_p), lambda i: (0, 0)),   # W1 (resident)
            pl.BlockSpec((1, hidden_p), lambda i: (0, 0)),       # b1
            pl.BlockSpec((hidden_p, dim_p), lambda i: (0, 0)),   # W2 (resident)
            pl.BlockSpec((1, dim_p), lambda i: (0, 0)),          # b2
        ]
        out_specs = pl.BlockSpec((tm, dim_p), lambda i: (i, 0))
        scratch_shapes = []
        kernel = _ffn_kernel_fast
        dim_sem = ("parallel",)
    else:
        grid = (grid0, hidden_p // th)
        in_specs = [
            pl.BlockSpec((tm, dim_p), lambda i, k: (i, 0)),      # x rows tile
            pl.BlockSpec((dim_p, th), lambda i, k: (0, k)),      # W1 hidden chunk
            pl.BlockSpec((1, th), lambda i, k: (0, k)),          # b1 hidden chunk
            pl.BlockSpec((th, dim_p), lambda i, k: (k, 0)),      # W2 hidden chunk
            pl.BlockSpec((1, dim_p), lambda i, k: (0, 0)),       # b2 (constant)
        ]
        out_specs = pl.BlockSpec((tm, dim_p), lambda i, k: (i, 0))
        scratch_shapes = [pltpu.VMEM((tm, dim_p), jnp.float32)]
        kernel = _ffn_kernel_red
        dim_sem = ("parallel", "arbitrary")

    out = pl.pallas_call(
        kernel,
        out_shape=jax.ShapeDtypeStruct((M_p, dim_p), out_dtype),
        grid_spec=pltpu.PrefetchScalarGridSpec(
            num_scalar_prefetch=0,
            grid=grid,
            in_specs=in_specs,
            out_specs=out_specs,
            scratch_shapes=scratch_shapes,
        ),
        compiler_params=pltpu.CompilerParams(
            dimension_semantics=dim_sem,
            vmem_limit_bytes=vmem_limit,
        ),
        cost_estimate=cost,
    )(x2d, w1, b1, w2, b2)

    return out[:M, :dim].reshape(batch, seq, dim)


def _init_params(key, dim, hidden_dim, dtype=jnp.float32):
    """Deterministic init mimicking nn.Linear defaults (uniform(-1/sqrt(fan_in), ...)).
    Weights stored pre-transposed as (in, out)."""
    k1, k2, k3, k4 = jax.random.split(key, 4)
    bound1 = 1.0 / math.sqrt(dim)
    bound2 = 1.0 / math.sqrt(hidden_dim)
    w1 = jax.random.uniform(k1, (dim, hidden_dim), dtype, -bound1, bound1)
    b1 = jax.random.uniform(k2, (hidden_dim,), dtype, -bound1, bound1)
    w2 = jax.random.uniform(k3, (hidden_dim, dim), dtype, -bound2, bound2)
    b2 = jax.random.uniform(k4, (dim,), dtype, -bound2, bound2)
    return w1, b1, w2, b2


if __name__ == "__main__":
    batch, seq, dim, hidden_dim = 2, 8, 32, 64

    key = jax.random.PRNGKey(0)
    kx, kp = jax.random.split(key)
    x = jax.random.normal(kx, (batch, seq, dim), dtype=jnp.float32)
    w1, b1, w2, b2 = _init_params(kp, dim, hidden_dim)

    # Recommended usage: pad weights once, outside the hot (jitted) path.
    w1_p, b1_p, w2_p, b2_p = prepare_ffn_params(w1, b1, w2, b2)

    out = feed_forward(x, w1_p, b1_p, w2_p, b2_p)
    out = jax.block_until_ready(out)

    # Pure-JAX reference check (exact erf GELU, dropout = identity).
    h_ref = x.reshape(-1, dim) @ w1 + b1
    h_ref = 0.5 * h_ref * (1.0 + lax.erf(h_ref / math.sqrt(2.0)))
    ref = (h_ref @ w2 + b2).reshape(batch, seq, dim)
    assert jnp.allclose(out, ref, atol=1e-5, rtol=1e-5), "mismatch vs reference"

    print("KERNEL_OK")
</pallas_src>

<mosaic_0001>
module attributes {stable_mosaic.version = 11 : i64} {
  func.func @_ffn_kernel_fast(%arg0: i32, %arg1: memref<16x128xf32, #tpu.memory_space<vmem>>, %arg2: memref<128x128xf32, #tpu.memory_space<vmem>>, %arg3: memref<1x128xf32, #tpu.memory_space<vmem>>, %arg4: memref<128x128xf32, #tpu.memory_space<vmem>>, %arg5: memref<1x128xf32, #tpu.memory_space<vmem>>, %arg6: memref<16x128xf32, #tpu.memory_space<vmem>>) attributes {dimension_semantics = [#tpu.dimension_semantics<parallel>], iteration_bounds = array<i64: 1>, scalar_prefetch = 0 : i64, scratch_operands = 0 : i64, tpu.core_type = #tpu.core_type<tc>, window_params = [{transform_indices = @transform_0, window_bounds = array<i64: 16, 128>}, {pipeline_mode = #tpu.pipeline_mode<synchronous>, transform_indices = @transform_1, window_bounds = array<i64: 128, 128>}, {pipeline_mode = #tpu.pipeline_mode<synchronous>, transform_indices = @transform_2, window_bounds = array<i64: 1, 128>}, {pipeline_mode = #tpu.pipeline_mode<synchronous>, transform_indices = @transform_3, window_bounds = array<i64: 128, 128>}, {pipeline_mode = #tpu.pipeline_mode<synchronous>, transform_indices = @transform_4, window_bounds = array<i64: 1, 128>}, {transform_indices = @transform_5, window_bounds = array<i64: 16, 128>}]} {
    %c0 = arith.constant 0 : index
    %c0_0 = arith.constant 0 : index
    %0 = vector.load %arg1[%c0, %c0_0] : memref<16x128xf32, #tpu.memory_space<vmem>>, vector<16x128xf32>
    %c0_1 = arith.constant 0 : index
    %c0_2 = arith.constant 0 : index
    %1 = vector.load %arg2[%c0_1, %c0_2] : memref<128x128xf32, #tpu.memory_space<vmem>>, vector<128x128xf32>
    %cst = arith.constant dense<0.000000e+00> : vector<16x128xf32>
    %2 = tpu.matmul %0, %1, %cst {dimension_numbers = #tpu.dot_dimension_numbers<[1], [0], [0], [1], [0, 0, 1, 1], [], []>} : vector<16x128xf32>, vector<128x128xf32>, vector<16x128xf32> -> vector<16x128xf32>
    %c0_3 = arith.constant 0 : index
    %c0_4 = arith.constant 0 : index
    %3 = vector.load %arg3[%c0_3, %c0_4] : memref<1x128xf32, #tpu.memory_space<vmem>>, vector<1x128xf32>
    %4 = vector.broadcast %3 : vector<1x128xf32> to vector<16x128xf32>
    %5 = arith.addf %2, %4 : vector<16x128xf32>
    %cst_5 = arith.constant 5.000000e-01 : f32
    %6 = vector.broadcast %cst_5 : f32 to vector<16x128xf32>
    %7 = arith.mulf %6, %5 : vector<16x128xf32>
    %cst_6 = arith.constant 0.707106769 : f32
    %8 = vector.broadcast %cst_6 : f32 to vector<16x128xf32>
    %9 = arith.mulf %5, %8 : vector<16x128xf32>
    %10 = math.erf %9 : vector<16x128xf32>
    %cst_7 = arith.constant 1.000000e+00 : f32
    %11 = vector.broadcast %cst_7 : f32 to vector<16x128xf32>
    %12 = arith.addf %11, %10 : vector<16x128xf32>
    %13 = arith.mulf %7, %12 : vector<16x128xf32>
    %c0_8 = arith.constant 0 : index
    %c0_9 = arith.constant 0 : index
    %14 = vector.load %arg4[%c0_8, %c0_9] : memref<128x128xf32, #tpu.memory_space<vmem>>, vector<128x128xf32>
    %cst_10 = arith.constant dense<0.000000e+00> : vector<16x128xf32>
    %15 = tpu.matmul %13, %14, %cst_10 {dimension_numbers = #tpu.dot_dimension_numbers<[1], [0], [0], [1], [0, 0, 1, 1], [], []>} : vector<16x128xf32>, vector<128x128xf32>, vector<16x128xf32> -> vector<16x128xf32>
    %c0_11 = arith.constant 0 : index
    %c0_12 = arith.constant 0 : index
    %16 = vector.load %arg5[%c0_11, %c0_12] : memref<1x128xf32, #tpu.memory_space<vmem>>, vector<1x128xf32>
    %17 = vector.broadcast %16 : vector<1x128xf32> to vector<16x128xf32>
    %18 = arith.addf %15, %17 : vector<16x128xf32>
    %c0_13 = arith.constant 0 : index
    %c0_14 = arith.constant 0 : index
    %19 = vector.load %arg6[%c0_13, %c0_14] : memref<16x128xf32, #tpu.memory_space<vmem>>, vector<16x128xf32>
    tpu.vector_store %arg6[%c0_13, %c0_14], %18 {strides = array<i32>} : memref<16x128xf32, #tpu.memory_space<vmem>>, vector<16x128xf32>,
    return
  }
  func.func @transform_0(%arg0: i32) -> (i32, i32) {
    %c0_i32 = arith.constant 0 : i32
    %c0_i32_0 = arith.constant 0 : i32
    return %arg0, %c0_i32 : i32, i32
  }
  func.func @transform_1(%arg0: i32) -> (i32, i32) {
    %c0_i32 = arith.constant 0 : i32
    %c0_i32_0 = arith.constant 0 : i32
    %c0_i32_1 = arith.constant 0 : i32
    return %c0_i32, %c0_i32_0 : i32, i32
  }
  func.func @transform_2(%arg0: i32) -> (i32, i32) {
    %c0_i32 = arith.constant 0 : i32
    %c0_i32_0 = arith.constant 0 : i32
    %c0_i32_1 = arith.constant 0 : i32
    return %c0_i32, %c0_i32_0 : i32, i32
  }
  func.func @transform_3(%arg0: i32) -> (i32, i32) {
    %c0_i32 = arith.constant 0 : i32
    %c0_i32_0 = arith.constant 0 : i32
    %c0_i32_1 = arith.constant 0 : i32
    return %c0_i32, %c0_i32_0 : i32, i32
  }
  func.func @transform_4(%arg0: i32) -> (i32, i32) {
    %c0_i32 = arith.constant 0 : i32
    %c0_i32_0 = arith.constant 0 : i32
    %c0_i32_1 = arith.constant 0 : i32
    return %c0_i32, %c0_i32_0 : i32, i32
  }
  func.func @transform_5(%arg0: i32) -> (i32, i32) {
    %c0_i32 = arith.constant 0 : i32
    %c0_i32_0 = arith.constant 0 : i32
    return %arg0, %c0_i32 : i32, i32
  }
}

</mosaic_0001>

<bundles_post_ra>
// kernel: feed_forward.1
= control target key start
LH: loop header
LB: loop body
LE: loop exit
PB: predicated region body
PF: predicated region fallthrough
CT: control target
= control target key end

     0   :  { %10 = vsyncpa [#allocation3], 0  ;;  %s568_s0 = inlined_call_operand.vmem [shape: f32[16,128], index: 0, kind: input, shape index: {}]   ;;  %s569_s1 = inlined_call_operand.hbm [shape: f32[128,128], index: 1, kind: input, shape index: {}]   ;;  %s570_s2 = inlined_call_operand.vmem [shape: f32[1,128], index: 2, kind: input, shape index: {}]   ;;  %s571_s3 = inlined_call_operand.hbm [shape: f32[128,128], index: 3, kind: input, shape index: {}]   ;;  %s572_s4 = inlined_call_operand.vmem [shape: f32[1,128], index: 4, kind: input, shape index: {}]   ;;  %s573_s5 = inlined_call_operand.vmem [shape: f32[16,128], index: 5, kind: output, shape index: {}]  }
   0x1   :  { %11 = vsyncpa [#allocation5], 0  ;;  %s492_s18 = smov [#allocation2]   ;;  %s444_s22 = scalar_lea.hbm %s569_s1, 2048 }
   0x2   :  { %s19_s19 = sshll.u32 %s492_s18, 4  ;;  %p445_p0 = scmp.ne.s32.totalorder %s569_s1, %s444_s22  ;;  %s20_s19 = int_to_ptr.vmem [resolvable:$true] %s19_s19 }
   0x3   :  { %p448_p1 = scmp.lt.u32.totalorder %s444_s22, %s569_s1 }
   0x5   :  { %p450_p2 = pnand %p448_p1, %p445_p0 }
   0x7   :  { %453 = shalt.err (!%p450_p2)
}
   0x8   :  { %s454_s27 = scalar_lea.vmem %s20_s19, 2048  ;;  %p459_p4 = scmp.lt.s32.totalorder %s20_s19, %s20_s19 }
   0x9   :  { %p455_p3 = scmp.ne.s32.totalorder %s20_s19, %s454_s27  ;;  %p460_p5 = scmp.lt.s32.totalorder %s454_s27, %s454_s27 }
   0xb   :  { %p461_p6 = por %p460_p5, %p459_p4 }
   0xd   :  { %p462_p7 = pnand %p461_p6, %p455_p3 }
   0xf   :  { %465 = shalt.err (!%p462_p7)
}
  0x10   :  { %s493_s28 = smov 128   ;;  %s494_s29 = smov 8  }
  0x11   :  { %25 = dma.hbm_to_vmem [thread:$0]  %s569_s1, 2048, %s20_s19, [#allocation3], %s493_s28, %s493_s28, %s494_s29  }
  0x12   :  { %s495_s7 = smov [#allocation4]   ;;  %s466_s11 = scalar_lea.hbm %s571_s3, 2048 }
  0x13   :  { %s33_s8 = sshll.u32 %s495_s7, 4  ;;  %p467_p8 = scmp.ne.s32.totalorder %s571_s3, %s466_s11  ;;  %s34_s8 = int_to_ptr.vmem [resolvable:$true] %s33_s8 }
  0x14   :  { %p470_p9 = scmp.lt.u32.totalorder %s466_s11, %s571_s3 }
  0x16   :  { %p472_p10 = pnand %p470_p9, %p467_p8 }
  0x18   :  { %475 = shalt.err (!%p472_p10)
}
  0x19   :  { %s476_s16 = scalar_lea.vmem %s34_s8, 2048  ;;  %p481_p12 = scmp.lt.s32.totalorder %s34_s8, %s34_s8 }
  0x1a   :  { %p477_p11 = scmp.ne.s32.totalorder %s34_s8, %s476_s16  ;;  %p482_p13 = scmp.lt.s32.totalorder %s476_s16, %s476_s16 }
  0x1c   :  { %p483_p0 = por %p482_p13, %p481_p12 }
  0x1e   :  { %p484_p1 = pnand %p483_p0, %p477_p11 }
  0x20   :  { %487 = shalt.err (!%p484_p1)
}
  0x21   :  { %39 = dma.hbm_to_vmem [thread:$0]  %s571_s3, 2048, %s34_s8, [#allocation5], %s493_s28, %s493_s28, %s494_s29  }
  0x22   :  { %488 = dma.done.wait [#allocation3], 2048  }
  0x23   :  { %489 = vsyncadd [#allocation3], 4294965248 }
  0x24   :  { %490 = dma.done.wait [#allocation5], 2048  }
  0x25   :  { %491 = vsyncadd [#allocation5], 4294965248  ;;  %v50_v0 = vld [vmem:[#allocation2] sm:$0xff]  ;;  %v51_v1 = vld [vmem:[#allocation2 + $0x8] sm:$0xff] }
  0x26   :  { %v52_v2 = vld [vmem:[#allocation2 + $0x10] sm:$0xff]  ;;  %v372_v3 = vpack.c.bf16 %v51_v1, %v50_v0  ;;  %v53_v4 = vld [vmem:[#allocation2 + $0x18] sm:$0xff]  ;;  %v54_v6 = vld [vmem:[#allocation2 + $0x20] sm:$0xff] }
  0x27   :  { %v376_v5 = vpack.c.bf16 %v53_v4, %v52_v2  ;;  %v55_v7 = vld [vmem:[#allocation2 + $0x28] sm:$0xff]  ;;  %v56_v9 = vld [vmem:[#allocation2 + $0x30] sm:$0xff]  ;;  %v57_v10 = vld [vmem:[#allocation2 + $0x38] sm:$0xff] }
  0x28   :  { %373 = vmatprep.subr.bf16.mxu0 %v372_v3  ;;  %v380_v8 = vpack.c.bf16 %v55_v7, %v54_v6  ;;  %v48_v11 = vld [vmem:[%s568_s0] sm:$0xff]  ;;  %v159_v13 = vld [vmem:[#allocation4 + $0x8] sm:$0xff]  ;;  %v160_v14 = vld [vmem:[#allocation4 + $0x10] sm:$0xff]  ;;  %v384_v20 = vpack.c.bf16 %v57_v10, %v56_v9 }
  0x29   :  { %375 = vmatpush3.bf16.msra.mxu0 %v372_v3  ;;  %334 = vmatprep.mubr.f32.mxu0 %v48_v11  ;;  %v158_v12 = vld [vmem:[#allocation4] sm:$0xff]  ;;  %v161_v16 = vld [vmem:[#allocation4 + $0x18] sm:$0xff]  ;;  %v163_v19 = vld [vmem:[#allocation4 + $0x28] sm:$0xff] }
  0x2a   :  { %377 = vmatprep.subr.bf16.mxu0 %v376_v5  ;;  %v404_v15 = vpack.c.bf16 %v159_v13, %v158_v12  ;;  %v408_v17 = vpack.c.bf16 %v161_v16, %v160_v14  ;;  %v162_v18 = vld [vmem:[#allocation4 + $0x20] sm:$0xff]  ;;  %v59_v22 = vld [vmem:[#allocation2 + $0x48] sm:$0xff]  ;;  %v60_v25 = vld [vmem:[#allocation2 + $0x50] sm:$0xff] }
  0x2b   :  { %v58_v21 = vld [vmem:[#allocation2 + $0x40] sm:$0xff]  ;;  %v412_v23 = vpack.c.bf16 %v163_v19, %v162_v18  ;;  %v61_v26 = vld [vmem:[#allocation2 + $0x58] sm:$0xff]  ;;  %v63_v29 = vld [vmem:[#allocation2 + $0x68] sm:$0xff] }
  0x2c   :  { %405 = vmatprep.subr.bf16.mxu1 %v404_v15  ;;  %v388_v24 = vpack.c.bf16 %v59_v22, %v58_v21  ;;  %v392_v27 = vpack.c.bf16 %v61_v26, %v60_v25  ;;  %v62_v28 = vld [vmem:[#allocation2 + $0x60] sm:$0xff]  ;;  %v64_v31 = vld [vmem:[#allocation2 + $0x70] sm:$0xff]  ;;  %v65_v32 = vld [vmem:[#allocation2 + $0x78] sm:$0xff] }
  0x2d   :  { %379 = vmatpush3.bf16.msra.mxu0 %v376_v5  ;;  %407 = vmatpush3.bf16.msra.mxu1 %v404_v15  ;;  %v396_v30 = vpack.c.bf16 %v63_v29, %v62_v28  ;;  %v400_v33 = vpack.c.bf16 %v65_v32, %v64_v31  ;;  %v49_v34 = vld [vmem:[%s568_s0 + $0x8] sm:$0xff]  ;;  %v164_v35 = vld [vmem:[#allocation4 + $0x30] sm:$0xff]  ;;  %v165_v36 = vld [vmem:[#allocation4 + $0x38] sm:$0xff] }
  0x2e   :  { %381 = vmatprep.subr.bf16.mxu0 %v380_v8  ;;  %409 = vmatprep.subr.bf16.mxu1 %v408_v17  ;;  %v416_v37 = vpack.c.bf16 %v165_v36, %v164_v35  ;;  %v166_v38 = vld [vmem:[#allocation4 + $0x40] sm:$0xff]  ;;  %v167_v39 = vld [vmem:[#allocation4 + $0x48] sm:$0xff]  ;;  %v168_v41 = vld [vmem:[#allocation4 + $0x50] sm:$0xff] }
  0x2f   :  { %v420_v40 = vpack.c.bf16 %v167_v39, %v166_v38  ;;  %v169_v42 = vld [vmem:[#allocation4 + $0x58] sm:$0xff]  ;;  %v170_v44 = vld [vmem:[#allocation4 + $0x60] sm:$0xff]  ;;  %v171_v45 = vld [vmem:[#allocation4 + $0x68] sm:$0xff] }
  0x30   :  { %v424_v43 = vpack.c.bf16 %v169_v42, %v168_v41  ;;  %v428_v46 = vpack.c.bf16 %v171_v45, %v170_v44  ;;  %v172_v47 = vld [vmem:[#allocation4 + $0x70] sm:$0xff]  ;;  %v173_v48 = vld [vmem:[#allocation4 + $0x78] sm:$0xff]  ;;  %v264_v50 = vld [vmem:[%s570_s2] ss:$0 sm:$0xff] }
  0x31   :  { %383 = vmatpush3.bf16.msra.mxu0 %v380_v8  ;;  %411 = vmatpush3.bf16.msra.mxu1 %v408_v17  ;;  %v432_v49 = vpack.c.bf16 %v173_v48, %v172_v47  ;;  %v265_v1 = vld [vmem:[%s572_s4] ss:$0 sm:$0xff] }
  0x32   :  { %385 = vmatprep.subr.bf16.mxu0 %v384_v20  ;;  %413 = vmatprep.subr.bf16.mxu1 %v412_v23 }
  0x35   :  { %387 = vmatpush3.bf16.msra.mxu0 %v384_v20  ;;  %415 = vmatpush3.bf16.msra.mxu1 %v412_v23 }
  0x36   :  { %389 = vmatprep.subr.bf16.mxu0 %v388_v24  ;;  %417 = vmatprep.subr.bf16.mxu1 %v416_v37 }
  0x39   :  { %391 = vmatpush3.bf16.msra.mxu0 %v388_v24  ;;  %419 = vmatpush3.bf16.msra.mxu1 %v416_v37 }
  0x3a   :  { %393 = vmatprep.subr.bf16.mxu0 %v392_v27  ;;  %421 = vmatprep.subr.bf16.mxu1 %v420_v40 }
  0x3d   :  { %395 = vmatpush3.bf16.msra.mxu0 %v392_v27  ;;  %423 = vmatpush3.bf16.msra.mxu1 %v420_v40 }
  0x3e   :  { %397 = vmatprep.subr.bf16.mxu0 %v396_v30  ;;  %425 = vmatprep.subr.bf16.mxu1 %v424_v43 }
  0x41   :  { %399 = vmatpush3.bf16.msra.mxu0 %v396_v30  ;;  %427 = vmatpush3.bf16.msra.mxu1 %v424_v43 }
  0x42   :  { %401 = vmatprep.subr.bf16.mxu0 %v400_v33  ;;  %429 = vmatprep.subr.bf16.mxu1 %v428_v46 }
  0x45   :  { %403 = vmatpush3.bf16.msra.mxu0 %v400_v33  ;;  %431 = vmatpush3.bf16.msra.mxu1 %v428_v46 }
  0x46   :  { %433 = vmatprep.subr.bf16.mxu1 %v432_v49 }
  0x48   :  { %335 = vmatmul.mubr.f32.vlgmr.msra.gmra.mrb[0].mxu0 %v49_v34 }
  0x49   :  { %435 = vmatpush3.bf16.msra.mxu1 %v432_v49 }
 0x11b   :  { %v336_v51 = vpop.f32.mrb[0].mxu0 }
 0x11c   :  { %v145_v52 = vadd.f32 %v336_v51, %v264_v50  ;;  %v139_v53 = vpop.f32.mrb[1].mxu0 }
 0x11d   :  { %v140_v54 = vadd.f32 %v264_v50, %v139_v53 }
 0x11e   :  { %v151_v55 = vmul.f32 0.70710677, %v145_v52  ;;  %v149_v62 = vmul.f32 0.5, %v145_v52 }
 0x11f   :  { %v150_v56 = vmul.f32 0.70710677, %v140_v54  ;;  %v148_v60 = vmul.f32 0.5, %v140_v54 }
 0x120   :  { %440 = verf.f32 %v151_v55 }
 0x121   :  { %442 = verf.f32 %v150_v56 }
 0x12a   :  { %v441_v57 = vpop.eup %440 }
 0x12b   :  { %v443_v58 = vpop.eup %442  ;;  %v155_v59 = vadd.f32 1.0, %v441_v57 }
 0x12c   :  { %v154_v61 = vadd.f32 1.0, %v443_v58 }
 0x12d   :  { %v157_v0 = vmul.f32 %v155_v59, %v149_v62 }
 0x12e   :  { %v156_v63 = vmul.f32 %v154_v61, %v148_v60 }
 0x130   :  { %369 = vmatprep.mubr.f32.mxu1 %v156_v63 }
 0x131   :  { %370 = vmatmul.mubr.f32.vlgmr.msra.gmra.mrb[0].mxu1 %v157_v0 }
 0x204   :  { %v371_v2 = vpop.f32.mrb[0].mxu1 }
 0x205   :  { %v253_v3 = vadd.f32 %v371_v2, %v265_v1  ;;  %v247_v4 = vpop.f32.mrb[1].mxu1 }
 0x206   :  { %v248_v5 = vadd.f32 %v265_v1, %v247_v4 }
 0x207   :  { %257 = vst [vmem:[%s573_s5 + $0x8] sm:$0xff] %v253_v3 }
 0x208   :  { %256 = vst [vmem:[%s573_s5] sm:$0xff] %v248_v5 }
 0x209   :  { %262 = vsyncpa [#allocation3], 1 }
 0x20a   :  { %263 = vsyncpa [#allocation5], 1 }

</bundles_post_ra>
